<compile_context>
chip_gen: v5e
topology: v5e:2x2
jax: 0.10.0
libtpu: 0.0.40
codegen_flags: <defaults>
</compile_context>

<pallas_src>
import jax
import jax.numpy as jnp
from jax import lax
from jax.experimental import pallas as pl
from jax.experimental.pallas import tpu as pltpu


def _linear_kernel(x_ref, w_ref, b_ref, o_ref, acc_ref):
    # Grid = (M tiles, N tiles, K tiles); K is the reduction axis (innermost,
    # "arbitrary") so the f32 accumulator persists per (i, j) output tile.
    @pl.when(pl.program_id(2) == 0)
    def _init():
        acc_ref[...] = jnp.zeros_like(acc_ref)

    # Canonical MXU contraction: x tile (tm, tk) @ w tile (tk, tn).
    acc_ref[...] += jnp.dot(
        x_ref[...], w_ref[...], preferred_element_type=jnp.float32
    )

    @pl.when(pl.program_id(2) == pl.num_programs(2) - 1)
    def _finalize():
        # Bias added once, in f32, on the final K step; then cast to out dtype.
        o_ref[...] = (acc_ref[...] + b_ref[...].astype(jnp.float32)).astype(o_ref.dtype)


def _round_up(x, m):
    return ((x + m - 1) // m) * m


def _tile_caps():
    """Generation-aware tile caps and scoped-VMEM limit (tm_cap, tn_cap, tk_cap, vmem)."""
    try:
        vmem_phys = pltpu.get_tpu_info().vmem_capacity_bytes
    except Exception:
        vmem_phys = 64 << 20  # be conservative (v7x-sized VMEM)
    if vmem_phys >= (100 << 20):
        # v5e / v6e: 128 MiB physical VMEM -> 1024-class tiles, raise scoped limit.
        return 1024, 1024, 1024, 96 << 20
    # v7x: 64 MiB physical / 32 MiB scoped default -> 512-class tiles, leave headroom.
    return 512, 512, 1024, 40 << 20


def _choose_tile(dim, cap, align):
    """Full dim if it fits one block (no padding, full-extent block waives the
    (8,128) rule); otherwise the aligned candidate in [cap/2, cap] with the
    least padding waste (largest wins ties)."""
    if dim <= cap:
        return dim
    best, best_pad = None, None
    t = cap
    low = max(align, cap // 2)
    while t >= low:
        pad = _round_up(dim, t) - dim
        if best is None or pad < best_pad:
            best, best_pad = t, pad
        t -= align
    return best


def linear_pallas(x, weight, bias, *, cast_to_bf16=False):
    """x: (M, in_dim), weight: (out_dim, in_dim) [PyTorch layout], bias: (out_dim,)."""
    m, k = x.shape
    n = weight.shape[0]
    out_dtype = x.dtype

    # One-time relayout to (K, N) so the kernel streams (tk, tn) weight tiles.
    wt = weight.T
    xw = x
    if cast_to_bf16:
        xw = xw.astype(jnp.bfloat16)
        wt = wt.astype(jnp.bfloat16)
    compute_dtype = xw.dtype
    itemsize = jnp.dtype(compute_dtype).itemsize

    tm_cap, tn_cap, tk_cap, vmem_limit = _tile_caps()
    m_align = max(8, 8 * (4 // max(1, itemsize)))  # sublane packing: 8 f32 / 16 bf16 / 32 int8

    tm = _choose_tile(m, tm_cap, m_align)
    tn = _choose_tile(n, tn_cap, 128)
    tk = _choose_tile(k, tk_cap, 128)

    mp = _round_up(m, tm)
    np_ = _round_up(n, tn)
    kp = _round_up(k, tk)

    # Pad only when a dim is actually tiled and does not divide evenly
    # (K zero-padding is safe for the reduction; padded M rows / N cols are
    # sliced off below).
    xp = xw if (mp == m and kp == k) else jnp.pad(xw, ((0, mp - m), (0, kp - k)))
    wp = wt if (kp == k and np_ == n) else jnp.pad(wt, ((0, kp - k), (0, np_ - n)))
    bp = bias if np_ == n else jnp.pad(bias, (0, np_ - n))
    b_row = bp.reshape(1, np_)

    grid = (mp // tm, np_ // tn, kp // tk)
    gm, gn, _ = grid

    cost = pl.CostEstimate(
        flops=2 * mp * np_ * kp,
        # x is re-read per N tile, w per M tile; bias per M tile; output written once.
        bytes_accessed=int(
            (mp * kp * gn + kp * np_ * gm + np_ * gm) * itemsize
            + mp * np_ * jnp.dtype(out_dtype).itemsize
        ),
        transcendentals=0,
    )

    out_padded = pl.pallas_call(
        _linear_kernel,
        out_shape=jax.ShapeDtypeStruct((mp, np_), out_dtype),
        grid_spec=pltpu.PrefetchScalarGridSpec(
            num_scalar_prefetch=0,
            grid=grid,
            in_specs=[
                pl.BlockSpec((tm, tk), lambda i, j, kk: (i, kk)),   # x tile (tm, tk)
                pl.BlockSpec((tk, tn), lambda i, j, kk: (kk, j)),   # weight tile (tk, tn)
                pl.BlockSpec((1, tn), lambda i, j, kk: (0, j)),     # bias row tile
            ],
            out_specs=pl.BlockSpec((tm, tn), lambda i, j, kk: (i, j)),
            scratch_shapes=[pltpu.VMEM((tm, tn), jnp.float32)],
        ),
        compiler_params=pltpu.CompilerParams(
            # On v7x, pltpu.CORE_PARALLEL on the leading axis can engage both
            # TensorCores explicitly; plain "parallel" is the portable default.
            dimension_semantics=("parallel", "parallel", "arbitrary"),
            vmem_limit_bytes=vmem_limit,
        ),
        cost_estimate=cost,
    )(xp, wp, b_row)

    if mp == m and np_ == n:
        return out_padded
    return out_padded[:m, :n]


if __name__ == "__main__":
    # Small shapes consistent with the module's forward: y = x @ W^T + b.
    batch, input_dim, output_dim = 8, 32, 16

    key = jax.random.PRNGKey(0)
    kx, kw, kb = jax.random.split(key, 3)

    x = jax.random.normal(kx, (batch, input_dim), dtype=jnp.float32)

    # Deterministic init mimicking nn.Linear: U(-1/sqrt(in), 1/sqrt(in))
    bound = 1.0 / jnp.sqrt(jnp.float32(input_dim))
    weight = jax.random.uniform(
        kw, (output_dim, input_dim), minval=-bound, maxval=bound, dtype=jnp.float32
    )
    bias = jax.random.uniform(
        kb, (output_dim,), minval=-bound, maxval=bound, dtype=jnp.float32
    )

    y = linear_pallas(x, weight, bias)
    jax.block_until_ready(y)

    y_ref = jnp.dot(x, weight.T, precision=lax.Precision.HIGHEST) + bias
    assert y.shape == (batch, output_dim)
    assert jnp.allclose(y, y_ref, atol=1e-5, rtol=1e-5)

    # Second check: moderately larger shape that exercises the multi-block
    # tiled path (and N-padding on the 512-class tile config).
    m2, k2, n2 = 1040, 1536, 640
    kx2, kw2, kb2 = jax.random.split(jax.random.PRNGKey(1), 3)
    x2 = jax.random.normal(kx2, (m2, k2), dtype=jnp.float32)
    b2 = 1.0 / jnp.sqrt(jnp.float32(k2))
    w2 = jax.random.uniform(kw2, (n2, k2), minval=-b2, maxval=b2, dtype=jnp.float32)
    bias2 = jax.random.uniform(kb2, (n2,), minval=-b2, maxval=b2, dtype=jnp.float32)

    y2 = linear_pallas(x2, w2, bias2)
    jax.block_until_ready(y2)
    y2_ref = jnp.dot(x2, w2.T, precision=lax.Precision.HIGHEST) + bias2
    assert y2.shape == (m2, n2)
    assert jnp.allclose(y2, y2_ref, atol=5e-3, rtol=5e-3)

    print("KERNEL_OK")
</pallas_src>

<mosaic_0001>
module attributes {stable_mosaic.version = 11 : i64} {
  func.func @_linear_kernel(%arg0: i32, %arg1: i32, %arg2: i32, %arg3: memref<8x32xf32, #tpu.memory_space<vmem>>, %arg4: memref<32x16xf32, #tpu.memory_space<vmem>>, %arg5: memref<1x16xf32, #tpu.memory_space<vmem>>, %arg6: memref<8x16xf32, #tpu.memory_space<vmem>>, %arg7: memref<8x16xf32, #tpu.memory_space<vmem>>) attributes {dimension_semantics = [#tpu.dimension_semantics<parallel>, #tpu.dimension_semantics<parallel>, #tpu.dimension_semantics<arbitrary>], iteration_bounds = array<i64: 1, 1, 1>, scalar_prefetch = 0 : i64, scratch_operands = 1 : i64, tpu.core_type = #tpu.core_type<tc>, window_params = [{transform_indices = @transform_0, window_bounds = array<i64: 8, 32>}, {transform_indices = @transform_1, window_bounds = array<i64: 32, 16>}, {transform_indices = @transform_2, window_bounds = array<i64: 1, 16>}, {transform_indices = @transform_3, window_bounds = array<i64: 8, 16>}]} {
    %c0_i32 = arith.constant 0 : i32
    %0 = arith.cmpi eq, %arg2, %c0_i32 : i32
    %1 = arith.extui %0 : i1 to i32
    %c0_i32_0 = arith.constant 0 : i32
    %2 = arith.cmpi ne, %1, %c0_i32_0 : i32
    scf.if %2 {
      %cst_10 = arith.constant 0.000000e+00 : f32
      %12 = vector.broadcast %cst_10 : f32 to vector<8x16xf32>
      %c0_11 = arith.constant 0 : index
      %c0_12 = arith.constant 0 : index
      %13 = vector.load %arg7[%c0_11, %c0_12] : memref<8x16xf32, #tpu.memory_space<vmem>>, vector<8x16xf32>
      tpu.vector_store %arg7[%c0_11, %c0_12], %12 {strides = array<i32>} : memref<8x16xf32, #tpu.memory_space<vmem>>, vector<8x16xf32>,
    } else {
    }
    %c0 = arith.constant 0 : index
    %c0_1 = arith.constant 0 : index
    %3 = vector.load %arg7[%c0, %c0_1] : memref<8x16xf32, #tpu.memory_space<vmem>>, vector<8x16xf32>
    %c0_2 = arith.constant 0 : index
    %c0_3 = arith.constant 0 : index
    %4 = vector.load %arg3[%c0_2, %c0_3] : memref<8x32xf32, #tpu.memory_space<vmem>>, vector<8x32xf32>
    %c0_4 = arith.constant 0 : index
    %c0_5 = arith.constant 0 : index
    %5 = vector.load %arg4[%c0_4, %c0_5] : memref<32x16xf32, #tpu.memory_space<vmem>>, vector<32x16xf32>
    %cst = arith.constant dense<0.000000e+00> : vector<8x16xf32>
    %6 = tpu.matmul %4, %5, %cst {dimension_numbers = #tpu.dot_dimension_numbers<[1], [0], [0], [1], [0, 0, 1, 1], [], []>} : vector<8x32xf32>, vector<32x16xf32>, vector<8x16xf32> -> vector<8x16xf32>
    %7 = arith.addf %3, %6 : vector<8x16xf32>
    %c0_6 = arith.constant 0 : index
    %c0_7 = arith.constant 0 : index
    %8 = vector.load %arg7[%c0_6, %c0_7] : memref<8x16xf32, #tpu.memory_space<vmem>>, vector<8x16xf32>
    tpu.vector_store %arg7[%c0_6, %c0_7], %7 {strides = array<i32>} : memref<8x16xf32, #tpu.memory_space<vmem>>, vector<8x16xf32>,
    %c0_i32_8 = arith.constant 0 : i32
    %9 = arith.cmpi eq, %arg2, %c0_i32_8 : i32
    %10 = arith.extui %9 : i1 to i32
    %c0_i32_9 = arith.constant 0 : i32
    %11 = arith.cmpi ne, %10, %c0_i32_9 : i32
    scf.if %11 {
      %c0_10 = arith.constant 0 : index
      %c0_11 = arith.constant 0 : index
      %12 = vector.load %arg7[%c0_10, %c0_11] : memref<8x16xf32, #tpu.memory_space<vmem>>, vector<8x16xf32>
      %c0_12 = arith.constant 0 : index
      %c0_13 = arith.constant 0 : index
      %13 = vector.load %arg5[%c0_12, %c0_13] : memref<1x16xf32, #tpu.memory_space<vmem>>, vector<1x16xf32>
      %14 = vector.broadcast %13 : vector<1x16xf32> to vector<8x16xf32>
      %15 = arith.addf %12, %14 : vector<8x16xf32>
      %c0_14 = arith.constant 0 : index
      %c0_15 = arith.constant 0 : index
      %16 = vector.load %arg6[%c0_14, %c0_15] : memref<8x16xf32, #tpu.memory_space<vmem>>, vector<8x16xf32>
      tpu.vector_store %arg6[%c0_14, %c0_15], %15 {strides = array<i32>} : memref<8x16xf32, #tpu.memory_space<vmem>>, vector<8x16xf32>,
    } else {
    }
    return
  }
  func.func @transform_0(%arg0: i32, %arg1: i32, %arg2: i32) -> (i32, i32) {
    %c0_i32 = arith.constant 0 : i32
    return %arg0, %arg2 : i32, i32
  }
  func.func @transform_1(%arg0: i32, %arg1: i32, %arg2: i32) -> (i32, i32) {
    %c0_i32 = arith.constant 0 : i32
    return %arg2, %arg1 : i32, i32
  }
  func.func @transform_2(%arg0: i32, %arg1: i32, %arg2: i32) -> (i32, i32) {
    %c0_i32 = arith.constant 0 : i32
    %c0_i32_0 = arith.constant 0 : i32
    return %c0_i32, %arg1 : i32, i32
  }
  func.func @transform_3(%arg0: i32, %arg1: i32, %arg2: i32) -> (i32, i32) {
    %c0_i32 = arith.constant 0 : i32
    return %arg0, %arg1 : i32, i32
  }
}

</mosaic_0001>

<bundles_post_ra>
// kernel: tpu_custom_call.1
= control target key start
LH: loop header
LB: loop body
LE: loop exit
PB: predicated region body
PF: predicated region fallthrough
CT: control target
= control target key end

     0   :  { %vm19_vm0 = vcmask 130048   ;;  %v110_v2 = vmov 0.0   ;;  %s156_s0 = inlined_call_operand.vmem [shape: f32[8,32], index: 0, kind: input, shape index: {}]   ;;  %s157_s1 = inlined_call_operand.vmem [shape: f32[32,16], index: 1, kind: input, shape index: {}]   ;;  %s158_s2 = inlined_call_operand.vmem [shape: f32[1,16], index: 2, kind: input, shape index: {}]   ;;  %s159_s3 = inlined_call_operand.hbm [shape: f32[8,16], index: 3, kind: output, shape index: {}]  }
   0x1   :  { %v26_v0 = vld [vmem:[%s157_s1 + $0x18] sm:$0xff]  ;;  %v25_v1 = vld [vmem:[%s157_s1 + $0x10] sm:$0xff]  ;;  %20 = vst.msk [vmem:[#allocation2] sm:$0xff] %vm19_vm0, %v110_v2 }
   0x2   :  { %43 = vmatpush.msra.mxu0 %v26_v0 }
   0x3   :  { %8 = vsyncpa [#allocation4], 0  ;;  %v24_v3 = vld [vmem:[%s157_s1 + $0x8] sm:$0xff]  ;;  %v23_v4 = vld [vmem:[%s157_s1] sm:$0xff]  ;;  %vm27_vm1 = vcmask 261120   ;;  %s111_s24 = smov [#allocation3]  }
   0x4   :  { %44 = vmatpush.msra.mxu0 %v25_v1  ;;  %v22_v5 = vld [vmem:[%s156_s0] sm:$0xff]  ;;  %s69_s25 = sshll.u32 %s111_s24, 4  ;;  %s71_s27 = sshll.u32 %s159_s3, 4  ;;  %s70_s25 = int_to_ptr.vmem [resolvable:$true] %s69_s25  ;;  %s72_s27 = int_to_ptr.hbm [resolvable:$true] %s71_s27 }
   0x5   :  { %v83_v9 = vld [vmem:[%s158_s2] ss:$0 sm:$0xff] }
   0x6   :  { %45 = vmatpush.msra.mxu0 %v24_v3 }
   0x8   :  { %46 = vmatpush.msra.mxu0 %v23_v4  ;;  %v21_v6 = vld [vmem:[#allocation2] sm:$0xff] }
   0x9   :  { %80 = vmatmul.msk.f32.vlgmr.msra.gmra.mxu0 %vm27_vm1, %v22_v5 }
  0x86   :  { %v48_v7 = vpop.f32.mrf.mxu0 }
  0x87   :  { %v51_v8 = vadd.f32 %v48_v7, %v21_v6 }
  0x89   :  { %53 = vst.msk [vmem:[#allocation2] sm:$0xff] %vm19_vm0, %v51_v8 }
  0x90   :  { %v57_v10 = vld [vmem:[#allocation2] sm:$0xff] }
  0x91   :  { %v62_v11 = vadd.f32 %v83_v9, %v57_v10 }
  0x93   :  { %63 = vst.msk [vmem:[#allocation3] sm:$0xff] %vm19_vm0, %v62_v11 }
  0x94   :  { %74 = dma.vmem_to_hbm [thread:$0]  %s70_s25, 128, %s72_s27, [#allocation4]  }
  0x95   :  { %108 = dma.done.wait [#allocation4], 128  }
  0x96   :  { %109 = vsyncadd [#allocation4], 4294967168 }
  0x97   :  { %79 = vsyncpa [#allocation4], 1 }

</bundles_post_ra>
